<compile_context>
chip_gen: v7x
topology: tpu7x:2x2x1
jax: 0.10.0
libtpu: 0.0.40
codegen_flags: <defaults>
</compile_context>

<pallas_src>
import jax
import jax.numpy as jnp
from jax.experimental import pallas as pl
from jax.experimental.pallas import tpu as pltpu


def freq_blend_kernel(alf_ref, blend_ref, his_ref, out_ref):
    # alf_ref   : SMEM (1, 1)   f32   -- sigmoid(alpha)
    # blend_ref : VMEM (1, tn)  f32   -- (1 - alf) * softmax(global_freq) tile
    # his_ref   : VMEM (tb, tn) dtype -- batch tile (caller dtype)
    # out_ref   : VMEM (tb, tn) dtype
    a = alf_ref[0, 0]
    h = his_ref[...].astype(jnp.float32)
    out_ref[...] = (a * h + blend_ref[...]).astype(out_ref.dtype)


def _choose_tiles(batch, n, itemsize, per_buffer_bytes=4 << 20):
    """Pick (tb, tn) so each double-buffered tile is ~4 MiB and lane-dense."""
    sub = max(8, 32 // itemsize)            # sublane multiple: 8 f32, 16 bf16, 32 i8
    # Lane (column) tile: multiple of 128 when the array allows, else full N.
    if n % 128 == 0:
        tn = min(n, 8192)
        tn = max(128, (tn // 128) * 128)
    else:
        tn = n                              # full lane dim (always legal)
    # Row tile from the per-buffer byte budget.
    tb = max(sub, per_buffer_bytes // max(1, tn * itemsize))
    tb = max(sub, (tb // sub) * sub)
    # v7x megacore: keep at least 2 batch tiles when the batch is big enough.
    if batch >= 2 * sub:
        half = ((batch + 1) // 2 + sub - 1) // sub * sub
        tb = min(tb, half)
    if tb >= batch:
        tb = batch                          # full batch dim in one block (legal)
    return tb, tn


def freq_forward(alf_raw, global_freq_weight, his):
    """alf_raw: ()/(1,) raw parameter; global_freq_weight: (1, N); his: (B, N)."""
    his = jnp.asarray(his)                  # keep the caller's dtype (bf16-friendly)
    B, N = his.shape

    # One-time tiny setup in plain JAX (exact math, no extra kernel dispatch).
    alf = jax.nn.sigmoid(jnp.asarray(alf_raw, jnp.float32).reshape(()))
    soft = jax.nn.softmax(
        jnp.asarray(global_freq_weight, jnp.float32).reshape(1, N), axis=1)
    blend = (1.0 - alf) * soft              # (1, N) f32, pre-scaled once
    alf_arr = alf.reshape(1, 1)             # (1, 1) f32 scalar for SMEM

    itemsize = jnp.dtype(his.dtype).itemsize
    tb, tn = _choose_tiles(B, N, itemsize)
    grid = (pl.cdiv(B, tb), pl.cdiv(N, tn))

    bytes_accessed = int(B * N * itemsize * 2 + N * 4)   # his in + out + blend row

    return pl.pallas_call(
        freq_blend_kernel,
        out_shape=jax.ShapeDtypeStruct((B, N), his.dtype),
        grid=grid,
        in_specs=[
            pl.BlockSpec(memory_space=pltpu.SMEM),            # alf scalar (whole array)
            pl.BlockSpec((1, tn), lambda i, j: (0, j)),       # blend row tile (resident over i)
            pl.BlockSpec((tb, tn), lambda i, j: (i, j)),      # his tile (double-buffered)
        ],
        out_specs=pl.BlockSpec((tb, tn), lambda i, j: (i, j)),
        compiler_params=pltpu.CompilerParams(
            dimension_semantics=("parallel", "parallel"),     # shard tiles on v7x
            vmem_limit_bytes=32 << 20,                        # room for 4 x ~4 MiB buffers
        ),
        cost_estimate=pl.CostEstimate(
            flops=2 * B * N, transcendentals=0, bytes_accessed=bytes_accessed),
    )(alf_arr, blend, his)


def reference_forward(alf_raw, global_freq_weight, his):
    alf = jax.nn.sigmoid(jnp.asarray(alf_raw, jnp.float32)).reshape(())
    soft = jax.nn.softmax(
        jnp.asarray(global_freq_weight, jnp.float32), axis=1).reshape(-1)
    return alf * jnp.asarray(his, jnp.float32) + (1.0 - alf) * soft


if __name__ == "__main__":
    key = jax.random.PRNGKey(0)
    k_emb, k_alf, k_his = jax.random.split(key, 3)

    # --- primary demo: batch=8, numItems=128, f32 (PyTorch defaults) --------
    B, N = 8, 128
    global_freq_weight = jax.random.normal(k_emb, (1, N), dtype=jnp.float32)
    alf_raw = jax.random.uniform(k_alf, (1,), dtype=jnp.float32)
    his = jax.random.uniform(k_his, (B, N), dtype=jnp.float32)

    out = jax.block_until_ready(freq_forward(alf_raw, global_freq_weight, his))
    ref = reference_forward(alf_raw, global_freq_weight, his)
    assert out.shape == (B, N) and out.dtype == jnp.float32
    assert jnp.allclose(out, ref, atol=1e-6, rtol=1e-6), "mismatch vs reference (f32)"

    # --- robustness: ragged shapes (B not %8, N not %128) --------------------
    B2, N2 = 20, 200
    gf2 = jax.random.normal(k_emb, (1, N2), dtype=jnp.float32)
    his2 = jax.random.uniform(k_his, (B2, N2), dtype=jnp.float32)
    out2 = jax.block_until_ready(freq_forward(alf_raw, gf2, his2))
    ref2 = reference_forward(alf_raw, gf2, his2)
    assert jnp.allclose(out2, ref2, atol=1e-6, rtol=1e-6), "mismatch vs reference (ragged)"

    # --- bf16 I/O path (halved HBM traffic; cast happens inside the kernel) --
    B3, N3 = 16, 128
    his3 = jax.random.uniform(k_his, (B3, N3), dtype=jnp.float32).astype(jnp.bfloat16)
    gf3 = jax.random.normal(k_emb, (1, N3), dtype=jnp.float32)
    out3 = jax.block_until_ready(freq_forward(alf_raw, gf3, his3))
    assert out3.dtype == jnp.bfloat16
    ref3 = reference_forward(alf_raw, gf3, his3)
    assert jnp.allclose(out3.astype(jnp.float32), ref3, atol=1e-2, rtol=1e-2), \
        "mismatch vs reference (bf16)"

    print("KERNEL_OK")
</pallas_src>

<mosaic_0001>
module attributes {stable_mosaic.version = 11 : i64} {
  func.func @freq_blend_kernel(%arg0: i32, %arg1: i32, %arg2: memref<1x1xf32, #tpu.memory_space<smem>>, %arg3: memref<1x128xf32, #tpu.memory_space<vmem>>, %arg4: memref<8x128xf32, #tpu.memory_space<vmem>>, %arg5: memref<8x128xf32, #tpu.memory_space<vmem>>) attributes {dimension_semantics = [#tpu.dimension_semantics<parallel>, #tpu.dimension_semantics<parallel>], iteration_bounds = array<i64: 1, 1>, scalar_prefetch = 0 : i64, scratch_operands = 0 : i64, tpu.core_type = #tpu.core_type<tc>, window_params = [{transform_indices = @transform_0, window_bounds = array<i64: 1, 1>}, {transform_indices = @transform_1, window_bounds = array<i64: 1, 128>}, {transform_indices = @transform_2, window_bounds = array<i64: 8, 128>}, {transform_indices = @transform_3, window_bounds = array<i64: 8, 128>}]} {
    %c0 = arith.constant 0 : index
    %c0_0 = arith.constant 0 : index
    %0 = memref.load %arg2[%c0, %c0_0] : memref<1x1xf32, #tpu.memory_space<smem>>
    %c0_1 = arith.constant 0 : index
    %c0_2 = arith.constant 0 : index
    %1 = vector.load %arg4[%c0_1, %c0_2] : memref<8x128xf32, #tpu.memory_space<vmem>>, vector<8x128xf32>
    %2 = vector.broadcast %0 : f32 to vector<8x128xf32>
    %3 = arith.mulf %2, %1 : vector<8x128xf32>
    %c0_3 = arith.constant 0 : index
    %c0_4 = arith.constant 0 : index
    %4 = vector.load %arg3[%c0_3, %c0_4] : memref<1x128xf32, #tpu.memory_space<vmem>>, vector<1x128xf32>
    %5 = vector.broadcast %4 : vector<1x128xf32> to vector<8x128xf32>
    %6 = arith.addf %3, %5 : vector<8x128xf32>
    %c0_5 = arith.constant 0 : index
    %c0_6 = arith.constant 0 : index
    %7 = vector.load %arg5[%c0_5, %c0_6] : memref<8x128xf32, #tpu.memory_space<vmem>>, vector<8x128xf32>
    tpu.vector_store %arg5[%c0_5, %c0_6], %6 {strides = array<i32>} : memref<8x128xf32, #tpu.memory_space<vmem>>, vector<8x128xf32>,
    return
  }
  func.func @transform_0(%arg0: i32, %arg1: i32) -> (i32, i32) {
    %c0_i32 = arith.constant 0 : i32
    %c0_i32_0 = arith.constant 0 : i32
    %c0_i32_1 = arith.constant 0 : i32
    return %c0_i32, %c0_i32_0 : i32, i32
  }
  func.func @transform_1(%arg0: i32, %arg1: i32) -> (i32, i32) {
    %c0_i32 = arith.constant 0 : i32
    %c0_i32_0 = arith.constant 0 : i32
    return %c0_i32, %arg1 : i32, i32
  }
  func.func @transform_2(%arg0: i32, %arg1: i32) -> (i32, i32) {
    %c0_i32 = arith.constant 0 : i32
    return %arg0, %arg1 : i32, i32
  }
  func.func @transform_3(%arg0: i32, %arg1: i32) -> (i32, i32) {
    %c0_i32 = arith.constant 0 : i32
    return %arg0, %arg1 : i32, i32
  }
}

</mosaic_0001>

<bundles_post_ra>
// kernel: tpu_custom_call.1
= control target key start
LH: loop header
LB: loop body
LE: loop exit
PB: predicated region body
PF: predicated region fallthrough
CT: control target
= control target key end

     0   :  { %9 = vsyncpa [#allocation4], 0  ;;  %s159_s0 = inlined_call_operand.<no memory space> [shape: f32[1,1], index: 0, kind: input, shape index: {}]   ;;  %s160_s1 = inlined_call_operand.vmem [shape: f32[1,128], index: 1, kind: input, shape index: {}]   ;;  %s161_s2 = inlined_call_operand.hbm [shape: f32[8,128], index: 2, kind: input, shape index: {}]   ;;  %s162_s3 = inlined_call_operand.hbm [shape: f32[8,128], index: 3, kind: output, shape index: {}]  }
   0x1   :  { %10 = vsyncpa [#allocation5], 0  ;;  %s107_s12 = smov [#allocation3]   ;;  %s59_s16 = scalar_lea.hbm %s161_s2, 128 }
   0x2   :  { %s21_s13 = sshll.u32 %s107_s12, 4  ;;  %p60_p0 = scmp.ne.s32.totalorder %s161_s2, %s59_s16  ;;  %s22_s13 = int_to_ptr.vmem [resolvable:$true] %s21_s13 }
   0x3   :  { %p63_p1 = scmp.lt.u32.totalorder %s59_s16, %s161_s2 }
   0x5   :  { %p65_p2 = pnand %p63_p1, %p60_p0 }
   0x7   :  { %68 = shalt.err (!%p65_p2)
}
   0x8   :  { %s69_s21 = scalar_lea.vmem %s22_s13, 128  ;;  %p74_p4 = scmp.lt.s32.totalorder %s22_s13, %s22_s13 }
   0x9   :  { %p70_p3 = scmp.ne.s32.totalorder %s22_s13, %s69_s21  ;;  %p75_p5 = scmp.lt.s32.totalorder %s69_s21, %s69_s21 }
   0xb   :  { %p76_p6 = por %p75_p5, %p74_p4 }
   0xd   :  { %p77_p7 = pnand %p76_p6, %p70_p3 }
   0xf   :  { %80 = shalt.err (!%p77_p7)
}
  0x10   :  { %24 = dma.hbm_to_vmem [thread:$0]  %s161_s2, 128, %s22_s13, [#allocation4]  }
  0x11   :  { %103 = dma.done.wait [#allocation4], 128  }
  0x12   :  { %104 = vsyncadd [#allocation4], 4294967168  ;;  %v30_v0 = vstv %s159_s0  ;;  %v29_v1 = vld [vmem:[#allocation3] sm:$0xff]  ;;  %s108_s28 = smov [#allocation6]  }
  0x13   :  { %v56_v2 = vld [vmem:[%s160_s1] ss:$0 sm:$0xff]  ;;  %s47_s29 = sshll.u32 %s108_s28, 4  ;;  %v31_v3 = vmul.f32 %v30_v0, %v29_v1  ;;  %s48_s29 = int_to_ptr.vmem [resolvable:$true] %s47_s29 }
  0x14   :  { %s81_s30 = scalar_lea.vmem %s48_s29, 128  ;;  %p86_p9 = scmp.lt.s32.totalorder %s48_s29, %s48_s29 }
  0x15   :  { %v39_v4 = vadd.f32 %v56_v2, %v31_v3  ;;  %p82_p8 = scmp.ne.s32.totalorder %s48_s29, %s81_s30  ;;  %p87_p10 = scmp.lt.s32.totalorder %s81_s30, %s81_s30 }
  0x17   :  { %40 = vst [vmem:[#allocation6] sm:$0xff] %v39_v4  ;;  %p88_p11 = por %p87_p10, %p86_p9 }
  0x19   :  { %p89_p12 = pnand %p88_p11, %p82_p8 }
  0x1b   :  { %92 = shalt.err (!%p89_p12)
}
  0x1c   :  { %s93_s4 = scalar_lea.hbm %s162_s3, 128 }
  0x1d   :  { %p94_p13 = scmp.ne.s32.totalorder %s162_s3, %s93_s4  ;;  %p97_p0 = scmp.lt.u32.totalorder %s93_s4, %s162_s3 }
  0x1f   :  { %p99_p1 = pnand %p97_p0, %p94_p13 }
  0x21   :  { %102 = shalt.err (!%p99_p1)
}
  0x22   :  { %50 = dma.vmem_to_hbm [thread:$0]  %s48_s29, 128, %s162_s3, [#allocation5]  }
  0x23   :  { %105 = dma.done.wait [#allocation5], 128  }
  0x24   :  { %106 = vsyncadd [#allocation5], 4294967168 }
  0x25   :  { %54 = vsyncpa [#allocation4], 1 }
  0x26   :  { %55 = vsyncpa [#allocation5], 1 }

</bundles_post_ra>
